<compile_context>
chip_gen: v5e
topology: v5e:2x2
jax: 0.10.0
libtpu: 0.0.40
codegen_flags: <defaults>
</compile_context>

<pallas_src>
import jax
import jax.numpy as jnp
from jax.experimental import pallas as pl
from jax.experimental.pallas import tpu as pltpu


def _round_up(x: int, m: int) -> int:
    return (x + m - 1) // m * m


def _final_block_kernel_residual(x_ref, w_ref, bias_ref, emb_ref, o_ref):
    """o = (w_scaled @ x) + bias + emb     (BN folded into w/bias; dropout == id)."""
    acc = jnp.dot(w_ref[...], x_ref[...], preferred_element_type=jnp.float32)
    acc = acc + bias_ref[...]                      # (Cout, 1) f32 broadcast over lanes
    acc = acc + emb_ref[...].astype(jnp.float32)   # residual add in f32
    o_ref[...] = acc.astype(o_ref.dtype)


def _final_block_kernel_plain(x_ref, w_ref, bias_ref, o_ref):
    """o = (w_scaled @ x) + bias           (no residual branch)."""
    acc = jnp.dot(w_ref[...], x_ref[...], preferred_element_type=jnp.float32)
    acc = acc + bias_ref[...]
    o_ref[...] = acc.astype(o_ref.dtype)


def efficientnet_final_block(hidden_states_nchw,     # (N, Cin, H, W)
                             embeddings_nchw,        # (N, Cout, H, W)
                             conv_weight,            # (Cout, Cin, 1, 1) torch layout
                             bn_gamma, bn_beta, bn_mean, bn_var,   # (Cout,)
                             *,
                             bn_eps: float = 1e-3,
                             apply_dropout: bool = True,
                             t_hw: int = 512,              # spatial (lane) tile, mult of 128
                             out_dtype=None,               # e.g. jnp.bfloat16 for bf16 models
                             vmem_limit_bytes=None):       # default scoped VMEM is plenty
    assert t_hw % 128 == 0, "t_hw must be a multiple of the lane count (128)"
    n, cin, h, w = hidden_states_nchw.shape
    cout = conv_weight.shape[0]
    hw = h * w
    in_dtype = hidden_states_nchw.dtype
    if out_dtype is None:
        out_dtype = in_dtype

    # --- free reshapes only: no transpose / pad / cast of the big streamed tensors ---
    x = hidden_states_nchw.reshape(n, cin, hw)

    # Fold eval-mode BN into the 1x1-conv weight (scale) and a (Cout, 1) f32 bias.
    scale = (bn_gamma / jnp.sqrt(bn_var + bn_eps)).astype(jnp.float32)        # (Cout,)
    shift = (bn_beta - bn_mean * scale).astype(jnp.float32)                   # (Cout,)
    w_mat = conv_weight[:, :, 0, 0].astype(jnp.float32) * scale[:, None]      # (Cout, Cin)
    w_mat = w_mat.astype(in_dtype)                                            # tiny tensor
    bias = shift.reshape(cout, 1)                                             # stays f32

    # --- choose the spatial tile / grid ---
    if hw <= t_hw:
        t_hw_eff, grid_hw = hw, 1                       # full dim: legal for any size
    else:
        t_hw_eff = t_hw                                 # multiple of 128
        grid_hw = pl.cdiv(hw, t_hw_eff)                 # ragged last block -> masked stores
    # v7x megacore: keep at least 2 grid steps so both TensorCores get work.
    if n * grid_hw < 2 and hw >= 256:
        t_hw_eff = _round_up(pl.cdiv(hw, 2), 128)
        grid_hw = pl.cdiv(hw, t_hw_eff)

    args = [x, w_mat, bias]
    in_specs = [
        pl.BlockSpec((None, cin, t_hw_eff), lambda b, j: (b, 0, j)),   # streamed activations
        pl.BlockSpec((cout, cin), lambda b, j: (0, 0)),                # resident folded weight
        pl.BlockSpec((cout, 1), lambda b, j: (0, 0)),                  # resident BN bias (f32)
    ]
    if apply_dropout:
        emb = embeddings_nchw.reshape(n, cout, hw)
        args.append(emb)
        in_specs.append(pl.BlockSpec((None, cout, t_hw_eff), lambda b, j: (b, 0, j)))
        kernel = _final_block_kernel_residual
    else:
        kernel = _final_block_kernel_plain

    # Advisory cost so XLA can overlap this HBM-bound call with neighbours.
    itm = jnp.dtype(in_dtype).itemsize
    bytes_accessed = (n * hw * cin * itm                       # x
                      + cout * cin * itm + cout * 4            # weight + bias
                      + n * hw * cout * jnp.dtype(out_dtype).itemsize)   # out
    if apply_dropout:
        bytes_accessed += n * hw * cout * jnp.dtype(embeddings_nchw.dtype).itemsize
    cost = pl.CostEstimate(flops=2 * n * hw * cin * cout,
                           transcendentals=0,
                           bytes_accessed=int(bytes_accessed))

    out = pl.pallas_call(
        kernel,
        out_shape=jax.ShapeDtypeStruct((n, cout, hw), out_dtype),     # true size, no slice
        grid_spec=pltpu.PrefetchScalarGridSpec(
            num_scalar_prefetch=0,
            grid=(n, grid_hw),
            in_specs=in_specs,
            out_specs=pl.BlockSpec((None, cout, t_hw_eff), lambda b, j: (b, 0, j)),
        ),
        compiler_params=pltpu.CompilerParams(
            dimension_semantics=("parallel", "parallel"),
            vmem_limit_bytes=vmem_limit_bytes),
        cost_estimate=cost,
    )(*args)

    return out.reshape(n, cout, h, w)                                 # free reshape


def _reference(hidden_states, embeddings, conv_weight,
               gamma, beta, mean, var, eps, apply_dropout):
    """Pure-JAX f32 reference of the PyTorch forward (eval mode), NCHW throughout."""
    w_mat = conv_weight[:, :, 0, 0].astype(jnp.float32)            # (Cout, Cin)
    y = jnp.einsum("oc,nchw->nohw", w_mat, hidden_states.astype(jnp.float32))
    scale = gamma / jnp.sqrt(var + eps)
    shift = beta - mean * scale
    y = y * scale[None, :, None, None] + shift[None, :, None, None]
    if apply_dropout:
        y = y + embeddings.astype(jnp.float32)
    return y


if __name__ == "__main__":
    key = jax.random.PRNGKey(0)
    k1, k2, k3, k4, k5, k6, k7 = jax.random.split(key, 7)

    # Small shapes consistent with the module (1x1 project conv in_dim -> out_dim).
    N, Cin, Cout, H, W = 2, 32, 16, 16, 16
    eps = 1e-3

    hidden_states = jax.random.normal(k1, (N, Cin, H, W), dtype=jnp.float32)
    embeddings = jax.random.normal(k2, (N, Cout, H, W), dtype=jnp.float32)
    conv_weight = jax.random.normal(k3, (Cout, Cin, 1, 1), dtype=jnp.float32) * 0.1
    bn_gamma = 1.0 + 0.1 * jax.random.normal(k4, (Cout,), dtype=jnp.float32)
    bn_beta = 0.1 * jax.random.normal(k5, (Cout,), dtype=jnp.float32)
    bn_mean = 0.05 * jax.random.normal(k6, (Cout,), dtype=jnp.float32)
    bn_var = jnp.abs(1.0 + 0.1 * jax.random.normal(k7, (Cout,), dtype=jnp.float32))

    ref = _reference(hidden_states, embeddings, conv_weight,
                     bn_gamma, bn_beta, bn_mean, bn_var, eps, True)

    # 1) f32, residual branch; hw=256 -> one full-dim spatial tile, grid (2, 1).
    out_f32 = efficientnet_final_block(
        hidden_states, embeddings, conv_weight,
        bn_gamma, bn_beta, bn_mean, bn_var,
        bn_eps=eps, apply_dropout=True)
    out_f32 = jax.block_until_ready(out_f32)
    assert out_f32.shape == (N, Cout, H, W)
    assert jnp.allclose(out_f32, ref, atol=1e-4, rtol=1e-4), "f32 mismatch vs reference"

    # 2) bf16 streaming path (as a bf16 model would feed it): no wrapper casts of the
    #    large tensors, f32 MXU accumulation, bf16 output.  Residual is added in f32
    #    after an (intentional) bf16 quantization of the stored embeddings.
    out_bf16 = efficientnet_final_block(
        hidden_states.astype(jnp.bfloat16), embeddings.astype(jnp.bfloat16), conv_weight,
        bn_gamma, bn_beta, bn_mean, bn_var,
        bn_eps=eps, apply_dropout=True, out_dtype=jnp.bfloat16)
    out_bf16 = jax.block_until_ready(out_bf16)
    assert out_bf16.dtype == jnp.bfloat16
    assert jnp.allclose(out_bf16.astype(jnp.float32), ref, atol=1e-1, rtol=1e-1), \
        "bf16 mismatch vs reference"

    # 3) no-residual branch + ragged spatial extent: H*W = 130 with t_hw=128 ->
    #    grid_hw = 2 with a masked partial last block (exercises the no-pad path).
    hs_r = hidden_states[:, :, :10, :13]
    emb_r = embeddings[:, :, :10, :13]
    out_r = efficientnet_final_block(
        hs_r, emb_r, conv_weight,
        bn_gamma, bn_beta, bn_mean, bn_var,
        bn_eps=eps, apply_dropout=False, t_hw=128)
    out_r = jax.block_until_ready(out_r)
    ref_r = _reference(hs_r, emb_r, conv_weight,
                       bn_gamma, bn_beta, bn_mean, bn_var, eps, False)
    assert out_r.shape == (N, Cout, 10, 13)
    assert jnp.allclose(out_r, ref_r, atol=1e-4, rtol=1e-4), \
        "ragged-tail / no-residual mismatch vs reference"

    # 4) N=1: the spatial tile is split so the grid keeps >= 2 steps (v7x megacore).
    out_1 = efficientnet_final_block(
        hidden_states[:1], embeddings[:1], conv_weight,
        bn_gamma, bn_beta, bn_mean, bn_var,
        bn_eps=eps, apply_dropout=True)
    out_1 = jax.block_until_ready(out_1)
    assert jnp.allclose(out_1, ref[:1], atol=1e-4, rtol=1e-4), \
        "N=1 split-grid mismatch vs reference"

    print("KERNEL_OK")
</pallas_src>

<mosaic_0001>
module attributes {stable_mosaic.version = 11 : i64} {
  func.func @_final_block_kernel_residual(%arg0: i32, %arg1: i32, %arg2: memref<1x32x256xf32, #tpu.memory_space<vmem>>, %arg3: memref<16x32xf32, #tpu.memory_space<vmem>>, %arg4: memref<16x1xf32, #tpu.memory_space<vmem>>, %arg5: memref<1x16x256xf32, #tpu.memory_space<vmem>>, %arg6: memref<1x16x256xf32, #tpu.memory_space<vmem>>) attributes {dimension_semantics = [#tpu.dimension_semantics<parallel>, #tpu.dimension_semantics<parallel>], iteration_bounds = array<i64: 2, 1>, scalar_prefetch = 0 : i64, scratch_operands = 0 : i64, tpu.core_type = #tpu.core_type<tc>, window_params = [{transform_indices = @transform_0, window_bounds = array<i64: 1, 32, 256>}, {pipeline_mode = #tpu.pipeline_mode<synchronous>, transform_indices = @transform_1, window_bounds = array<i64: 16, 32>}, {pipeline_mode = #tpu.pipeline_mode<synchronous>, transform_indices = @transform_2, window_bounds = array<i64: 16, 1>}, {transform_indices = @transform_3, window_bounds = array<i64: 1, 16, 256>}, {transform_indices = @transform_4, window_bounds = array<i64: 1, 16, 256>}]} {
    %c0 = arith.constant 0 : index
    %c0_0 = arith.constant 0 : index
    %0 = vector.load %arg3[%c0, %c0_0] : memref<16x32xf32, #tpu.memory_space<vmem>>, vector<16x32xf32>
    %c0_1 = arith.constant 0 : index
    %c0_2 = arith.constant 0 : index
    %c0_3 = arith.constant 0 : index
    %1 = vector.load %arg2[%c0_1, %c0_2, %c0_3] : memref<1x32x256xf32, #tpu.memory_space<vmem>>, vector<1x32x256xf32>
    %2 = vector.shape_cast %1 : vector<1x32x256xf32> to vector<32x256xf32>
    %cst = arith.constant dense<0.000000e+00> : vector<16x256xf32>
    %3 = tpu.matmul %0, %2, %cst {dimension_numbers = #tpu.dot_dimension_numbers<[1], [0], [0], [1], [0, 0, 1, 1], [], []>} : vector<16x32xf32>, vector<32x256xf32>, vector<16x256xf32> -> vector<16x256xf32>
    %c0_4 = arith.constant 0 : index
    %c0_5 = arith.constant 0 : index
    %4 = vector.load %arg4[%c0_4, %c0_5] : memref<16x1xf32, #tpu.memory_space<vmem>>, vector<16x1xf32>
    %5 = vector.broadcast %4 : vector<16x1xf32> to vector<16x256xf32>
    %6 = arith.addf %3, %5 : vector<16x256xf32>
    %c0_6 = arith.constant 0 : index
    %c0_7 = arith.constant 0 : index
    %c0_8 = arith.constant 0 : index
    %7 = vector.load %arg5[%c0_6, %c0_7, %c0_8] : memref<1x16x256xf32, #tpu.memory_space<vmem>>, vector<1x16x256xf32>
    %8 = vector.shape_cast %7 : vector<1x16x256xf32> to vector<16x256xf32>
    %9 = arith.addf %6, %8 : vector<16x256xf32>
    %c0_9 = arith.constant 0 : index
    %c0_10 = arith.constant 0 : index
    %c0_11 = arith.constant 0 : index
    %10 = vector.load %arg6[%c0_9, %c0_10, %c0_11] : memref<1x16x256xf32, #tpu.memory_space<vmem>>, vector<1x16x256xf32>
    %11 = vector.shape_cast %10 : vector<1x16x256xf32> to vector<16x256xf32>
    %12 = vector.shape_cast %9 : vector<16x256xf32> to vector<1x16x256xf32>
    tpu.vector_store %arg6[%c0_9, %c0_10, %c0_11], %12 {strides = array<i32>} : memref<1x16x256xf32, #tpu.memory_space<vmem>>, vector<1x16x256xf32>,
    return
  }
  func.func @transform_0(%arg0: i32, %arg1: i32) -> (i32, i32, i32) {
    %c0_i32 = arith.constant 0 : i32
    %c0_i32_0 = arith.constant 0 : i32
    return %arg0, %c0_i32, %arg1 : i32, i32, i32
  }
  func.func @transform_1(%arg0: i32, %arg1: i32) -> (i32, i32) {
    %c0_i32 = arith.constant 0 : i32
    %c0_i32_0 = arith.constant 0 : i32
    %c0_i32_1 = arith.constant 0 : i32
    return %c0_i32, %c0_i32_0 : i32, i32
  }
  func.func @transform_2(%arg0: i32, %arg1: i32) -> (i32, i32) {
    %c0_i32 = arith.constant 0 : i32
    %c0_i32_0 = arith.constant 0 : i32
    %c0_i32_1 = arith.constant 0 : i32
    return %c0_i32, %c0_i32_0 : i32, i32
  }
  func.func @transform_3(%arg0: i32, %arg1: i32) -> (i32, i32, i32) {
    %c0_i32 = arith.constant 0 : i32
    %c0_i32_0 = arith.constant 0 : i32
    return %arg0, %c0_i32, %arg1 : i32, i32, i32
  }
  func.func @transform_4(%arg0: i32, %arg1: i32) -> (i32, i32, i32) {
    %c0_i32 = arith.constant 0 : i32
    %c0_i32_0 = arith.constant 0 : i32
    return %arg0, %c0_i32, %arg1 : i32, i32, i32
  }
}

</mosaic_0001>

<bundles_post_ra>
// kernel: tpu_custom_call.1
= control target key start
LH: loop header
LB: loop body
LE: loop exit
PB: predicated region body
PF: predicated region fallthrough
CT: control target
= control target key end

     0   :  { %s954_s0 = inlined_call_operand.hbm [shape: f32[2,32,256], index: 0, kind: input, shape index: {}]   ;;  %s955_s1 = inlined_call_operand.vmem [shape: f32[16,32], index: 1, kind: input, shape index: {}]   ;;  %s956_s2 = inlined_call_operand.vmem [shape: f32[16,1], index: 2, kind: input, shape index: {}]   ;;  %s957_s3 = inlined_call_operand.hbm [shape: f32[2,16,256], index: 3, kind: input, shape index: {}]   ;;  %s958_s4 = inlined_call_operand.hbm [shape: f32[2,16,256], index: 4, kind: output, shape index: {}]  }
   0x1   :  { %960 = sst [smem:[#allocation12_spill]] %s954_s0 }
   0x2   :  { %9 = vsyncpa [#allocation3], 0 }
   0x3   :  { %11 = vsyncpa [#allocation3 + $0x1], 0 }
   0x4   :  { %12 = vsyncpa [#allocation6], 0 }
   0x5   :  { %14 = vsyncpa [#allocation6 + $0x1], 0 }
   0x6   :  { %15 = vsyncpa [#allocation4], 0 }
   0x7   :  { %17 = vsyncpa [#allocation4 + $0x1], 0  ;;  %s788_s15 = smov 0   ;;  %s790_s16 = smov 0  }
   0x8   :  { %s792_s17 = smov 0   ;;  %s794_s18 = smov 0  }
   0x9   :  { %s796_s19 = smov 0   ;;  %s798_s20 = smov 0  }
   0xa LB: > { %s503_s21 = sadd.s32 4294967295, %s756_s20   ;;  %s504_s22 = sadd.s32 4294967294, %s756_s20   ;;  %s756_s20 = sphi %s798_s20, %s23_s20   ;;  %s752_s19 = sphi %s796_s19, %s973_s19   ;;  %s748_s18 = sphi %s794_s18, %s972_s18   ;;  %s744_s17 = sphi %s792_s17, %s971_s17   ;;  %s740_s16 = sphi %s790_s16, %s970_s16   ;;  %s736_s15 = sphi %s788_s15, %s969_s15  }
   0xb   : > { %s35_s23 = sadd.s32 1, %s752_s19  ;;  %s44_s24 = sadd.s32 1, %s744_s17 }
   0xc   : > { %p37_p0 = scmp.ge.s32.totalorder %s35_s23, 2  ;;  %p51_p1 = scmp.ne.s32.totalorder %s744_s17, %s740_s16 }
   0xd   : > { %p52_p2 = scmp.eq.s32.totalorder %s756_s20, 0  ;;  %p57_p3 = scmp.ne.s32.totalorder %s740_s16, %s736_s15 }
   0xe   : > { %s975_s23 = smov (%p37_p0, %s35_s23), 0  ;;  %p58_p5 = scmp.eq.s32.totalorder %s503_s21, 0 }
   0xf   : > { %961 = sst [smem:[#allocation11_spill]] %s975_s23  ;;  %p829_p4 = por %p52_p2, %p51_p1 }
  0x10   : > { %s39_s26 = ssub.s32 %s752_s19, %s975_s23  ;;  %p153_p6 = scmp.eq.s32.totalorder %s503_s21, 1 }
  0x11   : > { %p42_p7 = scmp.eq.s32.totalorder %s39_s26, 0  ;;  %p835_p8 = por %p58_p5, %p57_p3 }
  0x12   : > { %p839_p9 = por %p153_p6, %p51_p1  ;;  %p159_p10 = scmp.eq.s32.totalorder %s504_s22, 1 }
  0x13   : > { %s844_s29 = scalar_select %p42_p7, %s744_s17, %s44_s24  }
  0x14   : > { %p846_p11 = por %p159_p10, %p57_p3  ;;  %p506_p12 = scmp.ge.s32.totalorder %s756_s20, 2 }
  0x15   : > { %p554_p13 = scmp.lt.s32.totalorder %s756_s20, 2  ;;  %s853_s5 = sand.u32 1, %s744_s17  }
  0x16   : > { %s507_s6 = sshll.u32 %s853_s5, 6  ;;  %s526_s7 = sshll.u32 %s752_s19, 6 }
  0x17   : > { %s966_s0 = sld [smem:[#allocation12_spill]]  ;;  %s189_s11 = scalar_lea.vmem [#allocation2], %s507_s6 }
  0x18   : > { %s199_s12 = sshll.u32 %s189_s11, 4  ;;  %p862_p0 = pnand %p554_p13, %p829_p4  ;;  %s200_s12 = int_to_ptr.vmem [resolvable:$true] %s199_s12 }
  0x19   : > { %p513_p1 = scmp.ge.s32.totalorder %s756_s20, 1  ;;  %s186_s21 = scalar_lea.sflag [#allocation3], %s853_s5 }
  0x1a   : > { %s758_s22 = smov 256   ;;  %s759_s24 = smov 16  }
  0x1b   : > { %p231_p2 = scmp.lt.s32.totalorder %s756_s20, 3  ;;  %s510_s26 = sshll.u32 %s853_s5, 5 }
  0x1c   : > { %s527_s6 = sshll.u32 %s752_s19, 5  ;;  %s213_s9 = scalar_lea.vmem [#allocation5], %s510_s26 }
  0x1d   : > { %s196_s10 = scalar_lea.hbm %s966_s0, %s526_s7  ;;  %p232_p3 = pnand %p513_p1, %p231_p2 }
  0x1e   : > { %s197_s13 = sshll.u32 %s196_s10, 4  ;;  %s220_s25 = scalar_lea.hbm %s957_s3, %s527_s6  ;;  %s198_s13 = int_to_ptr.hbm [resolvable:$true] %s197_s13 }
  0x1f   : > { %546 = dma.hbm_to_vmem [thread:$0]  (!%p862_p0), %s198_s13, 1024, %s200_s12, %s186_s21, %s758_s22, %s758_s22, %s759_s24  }
  0x20   : > { %s223_s10 = sshll.u32 %s213_s9, 4  ;;  %s221_s11 = sshll.u32 %s220_s25, 4  ;;  %s224_s10 = int_to_ptr.vmem [resolvable:$true] %s223_s10  ;;  %s222_s11 = int_to_ptr.hbm [resolvable:$true] %s221_s11 }
  0x21   : > { %s210_s0 = scalar_lea.sflag [#allocation6], %s853_s5  ;;  %235 = sbr.rel (%p232_p3) target bundleno = 193 (0xc1), region = 36 }
  0x22   : > { %549 = dma.hbm_to_vmem [thread:$0]  (!%p862_p0), %s222_s11, 512, %s224_s10, %s210_s0, %s758_s22, %s758_s22, %s759_s24  }
  0x23   : > { %s880_s12 = sand.u32 (!%p232_p3), 1, %s740_s16  }
  0x24   : > { %s514_s13 = sshll.u32 (!%p232_p3), %s880_s12, 6  ;;  %s238_s21 = scalar_lea.sflag (!%p232_p3), [#allocation3], %s880_s12 }
  0x25   : > { %s241_s23 = scalar_lea.vmem (!%p232_p3), [#allocation2], %s514_s13 }
  0x26   : > { %723 = dma.done.wait (%p835_p8), %s238_s21, 1024  }
  0x27   : > { %725 = vsyncadd (%p835_p8), %s238_s21, 4294966272  ;;  %s515_s0 = sshll.u32 %s880_s12, 5  ;;  %s248_s5 = scalar_lea.sflag [#allocation6], %s880_s12 }
  0x28   : > { %s892_s14 = scalar_lea.vmem [#allocation5], %s515_s0 }
  0x29   : > { %727 = dma.done.wait (%p835_p8), %s248_s5, 512  }
  0x2a   : > { %729 = vsyncadd (%p835_p8), %s248_s5, 4294966784  ;;  %v760_v0 = vmov 0   ;;  %v293_v1 = vld [vmem:[%s241_s23 + $0x30] sm:$0xff]  ;;  %v294_v2 = vld [vmem:[%s241_s23 + $0x38] sm:$0xff]  ;;  %vm307_vm0 = vcmask 261120   ;;  %s528_s25 = sshll.u32 %s748_s18, 5 }
  0x2b   : > { %609 = vset.pattern.permute.xlu0 %v760_v0  ;;  %v291_v3 = vld [vmem:[%s241_s23 + $0x20] sm:$0xff]  ;;  %326 = vmatpush.msra.mxu0 %v293_v1  ;;  %v292_v4 = vld [vmem:[%s241_s23 + $0x28] sm:$0xff]  ;;  %v289_v5 = vld [vmem:[%s241_s23 + $0x10] sm:$0xff]  ;;  %s386_s11 = scalar_lea.hbm %s958_s4, %s528_s25  ;;  %s281_s13 = scalar_lea.vmem [#allocation7], %s515_s0 }
  0x2c   : > { %529 = vmatpush.msra.mxu2 %v293_v1  ;;  %349 = vmatpush.msra.mxu1 %v294_v2  ;;  %v290_v6 = vld [vmem:[%s241_s23 + $0x18] sm:$0xff]  ;;  %v287_v7 = vld [vmem:[%s241_s23] sm:$0xff]  ;;  %v288_v8 = vld [vmem:[%s241_s23 + $0x8] sm:$0xff]  ;;  %s387_s21 = sshll.u32 %s281_s13, 4  ;;  %s389_s18 = sshll.u32 %s386_s11, 4  ;;  %s388_s21 = int_to_ptr.vmem [resolvable:$true] %s387_s21  ;;  %s390_s18 = int_to_ptr.hbm [resolvable:$true] %s389_s18 }
  0x2d   : > { %533 = vmatpush.msra.mxu3 %v294_v2  ;;  %327 = vmatpush.msra.mxu0 %v291_v3  ;;  %v285_v9 = vld [vmem:[%s955_s1] sm:$0xff]  ;;  %v286_v10 = vld [vmem:[%s955_s1 + $0x8] sm:$0xff]  ;;  %v362_v24 = vld [vmem:[%s892_s14 + $0x10] sm:$0xff]  ;;  %s373_s0 = scalar_lea.sflag [#allocation4], %s880_s12  ;;  %s684_s5 = sshra.s32 %s390_s18, 4  ;;  %s685_s5 = int_to_ptr.hbm [resolvable:$true] %s684_s5 }
  0x2e   : > { %530 = vmatpush.msra.mxu2 %v291_v3  ;;  %350 = vmatpush.msra.mxu1 %v292_v4  ;;  %v295_v11 = vld [vmem:[%s956_s2] sm:$0xff]  ;;  %v296_v12 = vld [vmem:[%s956_s2 + $0x8] sm:$0xff]  ;;  %v363_v27 = vld [vmem:[%s892_s14 + $0x18] sm:$0xff]  ;;  %s686_s27 = scalar_lea.hbm %s685_s5, 32  ;;  %s690_s26 = scalar_lea.hbm %s958_s4, 64 }
  0x2f   : > { %534 = vmatpush.msra.mxu3 %v292_v4  ;;  %328 = vmatpush.msra.mxu0 %v289_v5  ;;  %v360_v15 = vld [vmem:[%s892_s14] sm:$0xff]  ;;  %v361_v18 = vld [vmem:[%s892_s14 + $0x8] sm:$0xff]  ;;  %p687_p4 = scmp.ne.s32.totalorder %s685_s5, %s686_s27  ;;  %p691_p7 = scmp.lt.s32.totalorder %s685_s5, %s958_s4 }
  0x30   : > { %531 = vmatpush.msra.mxu2 %v289_v5  ;;  %351 = vmatpush.msra.mxu1 %v290_v6  ;;  %p692_p8 = scmp.lt.s32.totalorder %s690_s26, %s686_s27 }
  0x31   : > { %535 = vmatpush.msra.mxu3 %v290_v6  ;;  %329 = vmatpush.msra.mxu0 %v287_v7  ;;  %p688_p5 = pnand %p687_p4, %p839_p9 }
  0x32   : > { %532 = vmatpush.msra.mxu2 %v287_v7  ;;  %352 = vmatpush.msra.mxu1 %v288_v8  ;;  %p693_p10 = por %p692_p8, %p691_p7 }
  0x33   : > { %536 = vmatpush.msra.mxu3 %v288_v8  ;;  %517 = vmatmul.msk.f32.vlgmr.msra.gmra.mxu0 %vm307_vm0, %v285_v9  ;;  %p689_p6 = pneg %p688_p5 }
  0x34   : > { %518 = vmatmul.msk.f32.vlgmr.msra.gmra.mxu2 %vm307_vm0, %v286_v10  ;;  %519 = vmatmul.msk.f32.vlgmr.msra.gmra.mxu1 %vm307_vm0, %v285_v9 }
  0x35   : > { %520 = vmatmul.msk.f32.vlgmr.msra.gmra.mxu3 %vm307_vm0, %v286_v10  ;;  %299 = vperm.xlu0 %609, %v295_v11   ;;  %p694_p13 = pnand %p693_p10, %p689_p6 }
  0x3d   : > { %304 = vperm.xlu0 %609, %v296_v12  }
  0xa7   : > { %v300_v13 = vpop.permute.xlu0 %299 }
  0xaf   : > { %v305_v22 = vpop.permute.xlu0 %304 }
  0xb0   : > { %v331_v14 = vpop.f32.mrf.mxu0 }
  0xb1   : > { %v332_v16 = vadd.f32 %v331_v14, %v300_v13  ;;  %v354_v17 = vpop.f32.mrf.mxu1 }
  0xb2   : > { %v355_v19 = vadd.f32 %v354_v17, %v300_v13 }
  0xb3   : > { %v364_v20 = vadd.f32 %v360_v15, %v332_v16 }
  0xb4   : > { %v365_v21 = vadd.f32 %v361_v18, %v355_v19 }
  0xb5   : > { %368 = vst [vmem:[%s281_s13] sm:$0xff] %v364_v20 }
  0xb6   : > { %369 = vst [vmem:[%s281_s13 + $0x8] sm:$0xff] %v365_v21 }
  0xb7   : > { %v334_v23 = vpop.f32.mrf.mxu2 }
  0xb8   : > { %v335_v25 = vadd.f32 %v334_v23, %v305_v22  ;;  %v357_v26 = vpop.f32.mrf.mxu3 }
  0xb9   : > { %v358_v28 = vadd.f32 %v357_v26, %v305_v22 }
  0xba   : > { %v366_v29 = vadd.f32 %v362_v24, %v335_v25 }
  0xbb   : > { %v367_v30 = vadd.f32 %v363_v27, %v358_v28 }
  0xbc   : > { %370 = vst [vmem:[%s281_s13 + $0x10] sm:$0xff] %v366_v29 }
  0xbd   : > { %371 = vst [vmem:[%s281_s13 + $0x18] sm:$0xff] %v367_v30 }
  0xbe   : > { %697 = shalt.err (!%p694_p13)
}
  0xbf   : > { %s761_s12 = smov 256   ;;  %s762_s23 = smov 16  }
  0xc0   : > { %541 = dma.vmem_to_hbm [thread:$0]  (%p839_p9), %s388_s21, 512, %s390_s18, %s373_s0, %s761_s12, %s761_s12, %s762_s23  }
  0xc1 PF: > { %s404_s7 = sand.u32 1, %s736_s15   ;;  %p551_p0 = pnand %p506_p12, %p846_p11 }
  0xc2   : > { %s405_s8 = scalar_lea.sflag [#allocation4], %s404_s7 }
  0xc3   : > { %p552_p1 = pneg %p551_p0 }
  0xc5   : > { %731 = dma.done.wait (%p552_p1), %s405_s8, 512  }
  0xc6   : > { %733 = vsyncadd (%p552_p1), %s405_s8, 4294966784  ;;  %s23_s20 = sadd.s32 1, %s756_s20   ;;  %s968_s28 = sld [smem:[#allocation11_spill]] }
  0xc7   : > { %p20_p2 = scmp.ge.s32.totalorder %s23_s20, 4   ;;  %s969_s15 = smov %s740_s16 }
  0xc8   : > { %s970_s16 = smov %s744_s17  ;;  %s971_s17 = smov %s844_s29 }
  0xc9   : > { %s972_s18 = smov %s752_s19  ;;  %22 = sbr.rel (!%p20_p2) target bundleno = 10 (0xa), region = 94 }
  0xcc   : > { %s973_s19 = smov %s968_s28 }
  0xce   :  { %411 = vsyncpa [#allocation3], 1 }
  0xcf   :  { %413 = vsyncpa [#allocation3 + $0x1], 1 }
  0xd0   :  { %414 = vsyncpa [#allocation6], 1 }
  0xd1   :  { %416 = vsyncpa [#allocation6 + $0x1], 1 }
  0xd2   :  { %417 = vsyncpa [#allocation4], 1 }
  0xd3   :  { %419 = vsyncpa [#allocation4 + $0x1], 1 }

</bundles_post_ra>
